<compile_context>
chip_gen: v7x
topology: tpu7x:2x2x1
jax: 0.10.0
libtpu: 0.0.40
codegen_flags: <defaults>
</compile_context>

<pallas_src>
import functools

import jax
import jax.numpy as jnp
from jax.experimental import pallas as pl
from jax.experimental.pallas import tpu as pltpu


def _accumulate_tile(x_ref, t_ref, out_ref, row_mask, *, num_classes):
    """Accumulate CE / Dice partial sums for one (C, rows, 128) logits tile."""
    C = num_classes

    t = t_ref[...]                                        # (rows, 128) int32
    if row_mask is not None:
        t = jnp.where(row_mask, t, -1)                    # invalid rows -> no class

    # One full-vreg (rows, 128) slab per class; upcast bf16 -> f32 on load.
    xs = []
    for c in range(C):
        xc = x_ref[c].astype(jnp.float32)
        if row_mask is not None:
            xc = jnp.where(row_mask, xc, 0.0)             # select (NaN-safe), not mul
        xs.append(xc)

    # Softmax over classes as elementwise ops across the C slabs (pure VPU).
    m = xs[0]
    for c in range(1, C):
        m = jnp.maximum(m, xs[c])
    xms = [xc - m for xc in xs]                           # hoisted: reused below
    es = [jnp.exp(xm) for xm in xms]
    s = es[0]
    for c in range(1, C):
        s = s + es[c]
    inv_s = pl.reciprocal(s, approx=False)
    log_s = jnp.log(s)

    def rowsum(a):                                        # (rows, 128) -> (1, 128)
        return jnp.sum(a, axis=0, keepdims=True)

    inter_rows = []
    card_rows = []
    tgt_xm = None                                         # sum_c onehot_c * (x_c - m)
    tgt_cnt = None                                        # sum_c onehot_c
    for c in range(C):
        onehot = (t == c).astype(jnp.float32)
        p = es[c] * inv_s
        inter_rows.append(rowsum(p * onehot))
        card_rows.append(rowsum(p + onehot))
        txm = onehot * xms[c]
        tgt_xm = txm if tgt_xm is None else tgt_xm + txm
        tgt_cnt = onehot if tgt_cnt is None else tgt_cnt + onehot
    # Per-pixel CE = log(s) - (x_target - m); invalid pixels contribute 0.
    ce_row = rowsum(tgt_cnt * log_s - tgt_xm)             # (1, 128)

    out_ref[0] += jnp.concatenate(inter_rows, axis=0)     # (C, 128) intersection
    out_ref[1] += jnp.concatenate(card_rows, axis=0)      # (C, 128) cardinality
    out_ref[2] += ce_row                                  # broadcast over C rows


def _combined_loss_kernel(x_ref, t_ref, out_ref, *, num_classes, rows_per_step,
                          rows_total, shards, tiles_per_shard, ragged):
    g = pl.program_id(0)                                  # image (or image-shard)
    j = pl.program_id(1)                                  # pixel-row tile

    @pl.when(j == 0)
    def _():
        out_ref[...] = jnp.zeros_like(out_ref)

    if not ragged:
        _accumulate_tile(x_ref, t_ref, out_ref, None, num_classes=num_classes)
    else:
        if shards > 1:
            row_start = ((g % shards) * tiles_per_shard + j) * rows_per_step
        else:
            row_start = j * rows_per_step
        nvalid = rows_total - row_start                   # valid rows in this tile

        @pl.when(nvalid >= rows_per_step)                 # bulk tiles: no masking
        def _():
            _accumulate_tile(x_ref, t_ref, out_ref, None, num_classes=num_classes)

        @pl.when(nvalid < rows_per_step)                  # ragged tail only
        def _():
            rid = jax.lax.broadcasted_iota(jnp.int32, (rows_per_step, 128), 0)
            _accumulate_tile(x_ref, t_ref, out_ref, rid < nvalid,
                             num_classes=num_classes)


def _pick_rows_per_step(num_rows, num_classes, logit_itemsize, budget_bytes,
                        requested=None):
    """Largest row-of-128 tile that fits the VMEM budget (or the user request)."""
    align = 8 if logit_itemsize >= 4 else 16
    if requested is None:
        # Per row of 128 pixels: double-buffered logits + target blocks plus a
        # conservative estimate of the f32 temporaries in the kernel body.
        bytes_per_row = 128 * (2 * num_classes * logit_itemsize + 2 * 4
                               + (7 * num_classes + 6) * 4)
        requested = int(budget_bytes // bytes_per_row)
    if requested >= num_rows:
        return num_rows
    rt = max(align, (requested // align) * align)
    return num_rows if rt >= num_rows else rt


def combined_loss(logits, target, weights=(1.0, 1.0), smooth=1.0,
                  rows_per_step=None):
    """weights[0] * CrossEntropy(mean) + weights[1] * DiceLoss(mean)."""
    N, C, H, W = logits.shape
    HW = H * W
    P = N * HW
    if C < 2:
        # TODO(synk): sigmoid path of DiceLoss (C == 1) not implemented; the
        # CrossEntropy branch of CombinedLoss needs C >= 2 anyway.
        raise NotImplementedError("C == 1 (sigmoid) branch not implemented")

    # ---- layout: pixels on lanes (128) and sublanes (rows), one slab / class
    R = pl.cdiv(HW, 128)                       # rows of 128 pixels per image
    pad_cols = R * 128 - HW
    x = logits.reshape(N, C, HW)
    t = target.reshape(N, HW).astype(jnp.int32)
    if pad_cols:
        # TODO(synk): only when H*W is not a multiple of 128 (rare for real
        # image sizes); costs one extra HBM copy of the logits.
        x = jnp.pad(x, ((0, 0), (0, 0), (0, pad_cols)))          # logits pad = 0.0
        t = jnp.pad(t, ((0, 0), (0, pad_cols)), constant_values=-1)
    x = x.reshape(N, C, R, 128)                # free view of a contiguous array
    t = t.reshape(N, R, 128)

    # ---- generation-aware VMEM budget -> row-tile size ----------------------
    try:
        vmem_cap = int(pltpu.get_tpu_info().vmem_capacity_bytes)
    except Exception:                                      # conservative fallback
        vmem_cap = 64 * 1024 * 1024
    vmem_limit = min((vmem_cap * 3) // 4, 96 * 1024 * 1024)
    budget = min(vmem_limit // 2, 40 * 1024 * 1024)
    rt = _pick_rows_per_step(R, C, logits.dtype.itemsize, budget,
                             requested=rows_per_step)
    nblocks = pl.cdiv(R, rt)

    # ---- grid: images (parallel) x row tiles (arbitrary, reduction) ---------
    # For a single image, split its rows into 2 shards so both TensorCores of a
    # v7x megacore get work; on single-core chips this is just one extra step.
    S = 2 if (N == 1 and nblocks >= 2) else 1
    J = pl.cdiv(nblocks, S)
    NS = N * S
    ragged = (S * J * rt) != R                 # some tile reaches rows >= R

    if S > 1:
        # `% nblocks` keeps the (at most one) overshoot block in bounds; the
        # kernel masks it out entirely via nvalid <= 0.
        x_map = lambda g, j: (g // S, 0, ((g % S) * J + j) % nblocks, 0)
        t_map = lambda g, j: (g // S, ((g % S) * J + j) % nblocks, 0)
    else:
        x_map = lambda n, j: (n, 0, j, 0)
        t_map = lambda n, j: (n, j, 0)

    kernel = functools.partial(
        _combined_loss_kernel, num_classes=C, rows_per_step=rt, rows_total=R,
        shards=S, tiles_per_shard=J, ragged=ragged)

    partials = pl.pallas_call(
        kernel,
        out_shape=jax.ShapeDtypeStruct((NS, 3, C, 128), jnp.float32),
        grid_spec=pltpu.PrefetchScalarGridSpec(
            num_scalar_prefetch=0,
            grid=(NS, J),
            in_specs=[
                pl.BlockSpec((pl.Squeezed(), C, rt, 128), x_map),
                pl.BlockSpec((pl.Squeezed(), rt, 128), t_map),
            ],
            out_specs=pl.BlockSpec((pl.Squeezed(), 3, C, 128),
                                   lambda g, j: (g, 0, 0, 0)),
        ),
        compiler_params=pltpu.CompilerParams(
            dimension_semantics=("parallel", "arbitrary"),
            vmem_limit_bytes=int(vmem_limit)),
    )(x, t)

    # ---- tiny epilogue (negligible work) -------------------------------------
    inter = jnp.sum(partials[:, 0], axis=(0, 2))                    # (C,)
    card = jnp.sum(partials[:, 1], axis=(0, 2))                     # (C,)
    # Phantom columns (128-pad + ragged row tails) saw all-zero logits, i.e.
    # softmax == exactly 1/C: remove them analytically instead of masking p on
    # every tile.
    phantom = N * S * J * rt * 128 - P
    if phantom:
        card = card - jnp.float32(phantom) / jnp.float32(C)
    ce_sum = jnp.sum(partials[:, 2, 0, :])
    ce_loss = ce_sum / jnp.float32(P)
    dice_loss = jnp.mean(1.0 - (2.0 * inter + smooth) / (card + smooth))
    w_ce, w_dice = float(weights[0]), float(weights[1])
    return w_ce * ce_loss + w_dice * dice_loss


def _reference_combined_loss(logits, target, weights=(1.0, 1.0), smooth=1.0):
    """Plain-JAX reference matching the PyTorch CombinedLoss module."""
    x = logits.astype(jnp.float32)
    C = x.shape[1]
    logp = jax.nn.log_softmax(x, axis=1)
    onehot = jax.nn.one_hot(target, C, axis=1, dtype=jnp.float32)   # (N,C,H,W)
    ce = -jnp.mean(jnp.sum(onehot * logp, axis=1))
    p = jax.nn.softmax(x, axis=1)
    inter = jnp.sum(p * onehot, axis=(0, 2, 3))
    card = jnp.sum(p + onehot, axis=(0, 2, 3))
    dice = jnp.mean(1.0 - (2.0 * inter + smooth) / (card + smooth))
    return weights[0] * ce + weights[1] * dice


if __name__ == "__main__":
    key = jax.random.PRNGKey(0)
    k_logits, k_target = jax.random.split(key)

    # 1) main example: N=2, C=4, 16x16 (H*W multiple of 128 -> zero-copy views)
    N, C, H, W = 2, 4, 16, 16
    logits = jax.random.normal(k_logits, (N, C, H, W), dtype=jnp.float32)
    target = jax.random.randint(k_target, (N, H, W), 0, C, dtype=jnp.int32)
    out = jax.block_until_ready(combined_loss(logits, target))
    ref = _reference_combined_loss(logits, target)
    assert jnp.allclose(out, ref, rtol=1e-5, atol=1e-5), (out, ref)

    # 2) ragged spatial size (10x10): 128-pad path + analytic card correction
    logits2 = jax.random.normal(k_logits, (N, C, 10, 10), dtype=jnp.float32)
    target2 = jax.random.randint(k_target, (N, 10, 10), 0, C, dtype=jnp.int32)
    out2 = jax.block_until_ready(combined_loss(logits2, target2))
    ref2 = _reference_combined_loss(logits2, target2)
    assert jnp.allclose(out2, ref2, rtol=1e-5, atol=1e-5), (out2, ref2)

    # 3) N=1 with small row tiles: exercises the 2-way pixel sharding (v7x
    #    megacore path) and the in-kernel ragged row-tail masking.
    logits3 = jax.random.normal(k_logits, (1, C, 50, 50), dtype=jnp.float32)
    target3 = jax.random.randint(k_target, (1, 50, 50), 0, C, dtype=jnp.int32)
    out3 = jax.block_until_ready(
        combined_loss(logits3, target3, rows_per_step=8))
    ref3 = _reference_combined_loss(logits3, target3)
    assert jnp.allclose(out3, ref3, rtol=1e-5, atol=5e-5), (out3, ref3)

    # 4) bf16 logits stream through unchanged (kernel upcasts internally)
    out4 = jax.block_until_ready(
        combined_loss(logits.astype(jnp.bfloat16), target))
    ref4 = _reference_combined_loss(logits.astype(jnp.bfloat16), target)
    assert jnp.allclose(out4, ref4, rtol=1e-4, atol=1e-4), (out4, ref4)

    print("KERNEL_OK")
</pallas_src>

<mosaic_0001>
module attributes {stable_mosaic.version = 11 : i64} {
  func.func @_combined_loss_kernel(%arg0: i32, %arg1: i32, %arg2: memref<1x4x2x128xf32, #tpu.memory_space<vmem>>, %arg3: memref<1x2x128xi32, #tpu.memory_space<vmem>>, %arg4: memref<1x3x4x128xf32, #tpu.memory_space<vmem>>) attributes {dimension_semantics = [#tpu.dimension_semantics<parallel>, #tpu.dimension_semantics<arbitrary>], iteration_bounds = array<i64: 2, 1>, scalar_prefetch = 0 : i64, scratch_operands = 0 : i64, tpu.core_type = #tpu.core_type<tc>, window_params = [{transform_indices = @transform_0, window_bounds = array<i64: 1, 4, 2, 128>}, {transform_indices = @transform_1, window_bounds = array<i64: 1, 2, 128>}, {transform_indices = @transform_2, window_bounds = array<i64: 1, 3, 4, 128>}]} {
    %c0_i32 = arith.constant 0 : i32
    %0 = arith.cmpi eq, %arg1, %c0_i32 : i32
    %1 = arith.extui %0 : i1 to i32
    %c0_i32_0 = arith.constant 0 : i32
    %2 = arith.cmpi ne, %1, %c0_i32_0 : i32
    scf.if %2 {
      %cst_49 = arith.constant 0.000000e+00 : f32
      %108 = vector.broadcast %cst_49 : f32 to vector<3x4x128xf32>
      %c0_50 = arith.constant 0 : index
      %c0_51 = arith.constant 0 : index
      %c0_52 = arith.constant 0 : index
      %c0_53 = arith.constant 0 : index
      %109 = vector.load %arg4[%c0_50, %c0_51, %c0_52, %c0_53] : memref<1x3x4x128xf32, #tpu.memory_space<vmem>>, vector<1x3x4x128xf32>
      %110 = vector.shape_cast %109 : vector<1x3x4x128xf32> to vector<3x4x128xf32>
      %111 = vector.shape_cast %108 : vector<3x4x128xf32> to vector<1x3x4x128xf32>
      tpu.vector_store %arg4[%c0_50, %c0_51, %c0_52, %c0_53], %111 {strides = array<i32>} : memref<1x3x4x128xf32, #tpu.memory_space<vmem>>, vector<1x3x4x128xf32>,
    } else {
    }
    %c0 = arith.constant 0 : index
    %c0_1 = arith.constant 0 : index
    %c0_2 = arith.constant 0 : index
    %3 = vector.load %arg3[%c0, %c0_1, %c0_2] : memref<1x2x128xi32, #tpu.memory_space<vmem>>, vector<1x2x128xi32>
    %4 = vector.shape_cast %3 : vector<1x2x128xi32> to vector<2x128xi32>
    %c0_3 = arith.constant 0 : index
    %c0_4 = arith.constant 0 : index
    %c0_5 = arith.constant 0 : index
    %c0_6 = arith.constant 0 : index
    %5 = vector.load %arg2[%c0_3, %c0_4, %c0_5, %c0_6] : memref<1x4x2x128xf32, #tpu.memory_space<vmem>>, vector<1x1x2x128xf32>
    %6 = vector.shape_cast %5 : vector<1x1x2x128xf32> to vector<2x128xf32>
    %c0_7 = arith.constant 0 : index
    %c1 = arith.constant 1 : index
    %c0_8 = arith.constant 0 : index
    %c0_9 = arith.constant 0 : index
    %7 = vector.load %arg2[%c0_7, %c1, %c0_8, %c0_9] : memref<1x4x2x128xf32, #tpu.memory_space<vmem>>, vector<1x1x2x128xf32>
    %8 = vector.shape_cast %7 : vector<1x1x2x128xf32> to vector<2x128xf32>
    %c0_10 = arith.constant 0 : index
    %c2 = arith.constant 2 : index
    %c0_11 = arith.constant 0 : index
    %c0_12 = arith.constant 0 : index
    %9 = vector.load %arg2[%c0_10, %c2, %c0_11, %c0_12] : memref<1x4x2x128xf32, #tpu.memory_space<vmem>>, vector<1x1x2x128xf32>
    %10 = vector.shape_cast %9 : vector<1x1x2x128xf32> to vector<2x128xf32>
    %c0_13 = arith.constant 0 : index
    %c3 = arith.constant 3 : index
    %c0_14 = arith.constant 0 : index
    %c0_15 = arith.constant 0 : index
    %11 = vector.load %arg2[%c0_13, %c3, %c0_14, %c0_15] : memref<1x4x2x128xf32, #tpu.memory_space<vmem>>, vector<1x1x2x128xf32>
    %12 = vector.shape_cast %11 : vector<1x1x2x128xf32> to vector<2x128xf32>
    %13 = arith.maximumf %6, %8 : vector<2x128xf32>
    %14 = arith.maximumf %13, %10 : vector<2x128xf32>
    %15 = arith.maximumf %14, %12 : vector<2x128xf32>
    %16 = arith.subf %6, %15 : vector<2x128xf32>
    %17 = arith.subf %8, %15 : vector<2x128xf32>
    %18 = arith.subf %10, %15 : vector<2x128xf32>
    %19 = arith.subf %12, %15 : vector<2x128xf32>
    %20 = math.exp %16 : vector<2x128xf32>
    %21 = math.exp %17 : vector<2x128xf32>
    %22 = math.exp %18 : vector<2x128xf32>
    %23 = math.exp %19 : vector<2x128xf32>
    %24 = arith.addf %20, %21 : vector<2x128xf32>
    %25 = arith.addf %24, %22 : vector<2x128xf32>
    %26 = arith.addf %25, %23 : vector<2x128xf32>
    %27 = tpu.reciprocal %26 : vector<2x128xf32> -> vector<2x128xf32>
    %28 = math.log %26 : vector<2x128xf32>
    %c0_i32_16 = arith.constant 0 : i32
    %29 = vector.broadcast %c0_i32_16 : i32 to vector<2x128xi32>
    %30 = arith.cmpi eq, %4, %29 : vector<2x128xi32>
    %31 = arith.extui %30 : vector<2x128xi1> to vector<2x128xi32>
    %32 = arith.sitofp %31 : vector<2x128xi32> to vector<2x128xf32>
    %33 = arith.mulf %20, %27 : vector<2x128xf32>
    %34 = arith.mulf %33, %32 : vector<2x128xf32>
    %cst = arith.constant dense<0.000000e+00> : vector<128xf32>
    %35 = vector.multi_reduction <add>, %34, %cst [0] : vector<2x128xf32> to vector<128xf32>
    %36 = vector.shape_cast %35 : vector<128xf32> to vector<1x128xf32>
    %37 = arith.addf %33, %32 : vector<2x128xf32>
    %cst_17 = arith.constant dense<0.000000e+00> : vector<128xf32>
    %38 = vector.multi_reduction <add>, %37, %cst_17 [0] : vector<2x128xf32> to vector<128xf32>
    %39 = vector.shape_cast %38 : vector<128xf32> to vector<1x128xf32>
    %40 = arith.mulf %32, %16 : vector<2x128xf32>
    %c1_i32 = arith.constant 1 : i32
    %41 = vector.broadcast %c1_i32 : i32 to vector<2x128xi32>
    %42 = arith.cmpi eq, %4, %41 : vector<2x128xi32>
    %43 = arith.extui %42 : vector<2x128xi1> to vector<2x128xi32>
    %44 = arith.sitofp %43 : vector<2x128xi32> to vector<2x128xf32>
    %45 = arith.mulf %21, %27 : vector<2x128xf32>
    %46 = arith.mulf %45, %44 : vector<2x128xf32>
    %cst_18 = arith.constant dense<0.000000e+00> : vector<128xf32>
    %47 = vector.multi_reduction <add>, %46, %cst_18 [0] : vector<2x128xf32> to vector<128xf32>
    %48 = vector.shape_cast %47 : vector<128xf32> to vector<1x128xf32>
    %49 = arith.addf %45, %44 : vector<2x128xf32>
    %cst_19 = arith.constant dense<0.000000e+00> : vector<128xf32>
    %50 = vector.multi_reduction <add>, %49, %cst_19 [0] : vector<2x128xf32> to vector<128xf32>
    %51 = vector.shape_cast %50 : vector<128xf32> to vector<1x128xf32>
    %52 = arith.mulf %44, %17 : vector<2x128xf32>
    %53 = arith.addf %40, %52 : vector<2x128xf32>
    %54 = arith.addf %32, %44 : vector<2x128xf32>
    %c2_i32 = arith.constant 2 : i32
    %55 = vector.broadcast %c2_i32 : i32 to vector<2x128xi32>
    %56 = arith.cmpi eq, %4, %55 : vector<2x128xi32>
    %57 = arith.extui %56 : vector<2x128xi1> to vector<2x128xi32>
    %58 = arith.sitofp %57 : vector<2x128xi32> to vector<2x128xf32>
    %59 = arith.mulf %22, %27 : vector<2x128xf32>
    %60 = arith.mulf %59, %58 : vector<2x128xf32>
    %cst_20 = arith.constant dense<0.000000e+00> : vector<128xf32>
    %61 = vector.multi_reduction <add>, %60, %cst_20 [0] : vector<2x128xf32> to vector<128xf32>
    %62 = vector.shape_cast %61 : vector<128xf32> to vector<1x128xf32>
    %63 = arith.addf %59, %58 : vector<2x128xf32>
    %cst_21 = arith.constant dense<0.000000e+00> : vector<128xf32>
    %64 = vector.multi_reduction <add>, %63, %cst_21 [0] : vector<2x128xf32> to vector<128xf32>
    %65 = vector.shape_cast %64 : vector<128xf32> to vector<1x128xf32>
    %66 = arith.mulf %58, %18 : vector<2x128xf32>
    %67 = arith.addf %53, %66 : vector<2x128xf32>
    %68 = arith.addf %54, %58 : vector<2x128xf32>
    %c3_i32 = arith.constant 3 : i32
    %69 = vector.broadcast %c3_i32 : i32 to vector<2x128xi32>
    %70 = arith.cmpi eq, %4, %69 : vector<2x128xi32>
    %71 = arith.extui %70 : vector<2x128xi1> to vector<2x128xi32>
    %72 = arith.sitofp %71 : vector<2x128xi32> to vector<2x128xf32>
    %73 = arith.mulf %23, %27 : vector<2x128xf32>
    %74 = arith.mulf %73, %72 : vector<2x128xf32>
    %cst_22 = arith.constant dense<0.000000e+00> : vector<128xf32>
    %75 = vector.multi_reduction <add>, %74, %cst_22 [0] : vector<2x128xf32> to vector<128xf32>
    %76 = vector.shape_cast %75 : vector<128xf32> to vector<1x128xf32>
    %77 = arith.addf %73, %72 : vector<2x128xf32>
    %cst_23 = arith.constant dense<0.000000e+00> : vector<128xf32>
    %78 = vector.multi_reduction <add>, %77, %cst_23 [0] : vector<2x128xf32> to vector<128xf32>
    %79 = vector.shape_cast %78 : vector<128xf32> to vector<1x128xf32>
    %80 = arith.mulf %72, %19 : vector<2x128xf32>
    %81 = arith.addf %67, %80 : vector<2x128xf32>
    %82 = arith.addf %68, %72 : vector<2x128xf32>
    %83 = arith.mulf %82, %28 : vector<2x128xf32>
    %84 = arith.subf %83, %81 : vector<2x128xf32>
    %cst_24 = arith.constant dense<0.000000e+00> : vector<128xf32>
    %85 = vector.multi_reduction <add>, %84, %cst_24 [0] : vector<2x128xf32> to vector<128xf32>
    %86 = vector.shape_cast %85 : vector<128xf32> to vector<1x128xf32>
    %c0_25 = arith.constant 0 : index
    %c0_26 = arith.constant 0 : index
    %c0_27 = arith.constant 0 : index
    %c0_28 = arith.constant 0 : index
    %87 = vector.load %arg4[%c0_25, %c0_26, %c0_27, %c0_28] : memref<1x3x4x128xf32, #tpu.memory_space<vmem>>, vector<1x1x4x128xf32>
    %88 = vector.shape_cast %87 : vector<1x1x4x128xf32> to vector<4x128xf32>
    %89 = tpu.concatenate %36, %48, %62, %76 in 0 : vector<1x128xf32>, vector<1x128xf32>, vector<1x128xf32>, vector<1x128xf32> -> vector<4x128xf32>
    %90 = arith.addf %88, %89 : vector<4x128xf32>
    %c0_29 = arith.constant 0 : index
    %c0_30 = arith.constant 0 : index
    %c0_31 = arith.constant 0 : index
    %c0_32 = arith.constant 0 : index
    %91 = vector.load %arg4[%c0_29, %c0_30, %c0_31, %c0_32] : memref<1x3x4x128xf32, #tpu.memory_space<vmem>>, vector<1x1x4x128xf32>
    %92 = vector.shape_cast %91 : vector<1x1x4x128xf32> to vector<4x128xf32>
    %93 = vector.shape_cast %90 : vector<4x128xf32> to vector<1x1x4x128xf32>
    tpu.vector_store %arg4[%c0_29, %c0_30, %c0_31, %c0_32], %93 {strides = array<i32>} : memref<1x3x4x128xf32, #tpu.memory_space<vmem>>, vector<1x1x4x128xf32>,
    %c0_33 = arith.constant 0 : index
    %c1_34 = arith.constant 1 : index
    %c0_35 = arith.constant 0 : index
    %c0_36 = arith.constant 0 : index
    %94 = vector.load %arg4[%c0_33, %c1_34, %c0_35, %c0_36] : memref<1x3x4x128xf32, #tpu.memory_space<vmem>>, vector<1x1x4x128xf32>
    %95 = vector.shape_cast %94 : vector<1x1x4x128xf32> to vector<4x128xf32>
    %96 = tpu.concatenate %39, %51, %65, %79 in 0 : vector<1x128xf32>, vector<1x128xf32>, vector<1x128xf32>, vector<1x128xf32> -> vector<4x128xf32>
    %97 = arith.addf %95, %96 : vector<4x128xf32>
    %c0_37 = arith.constant 0 : index
    %c1_38 = arith.constant 1 : index
    %c0_39 = arith.constant 0 : index
    %c0_40 = arith.constant 0 : index
    %98 = vector.load %arg4[%c0_37, %c1_38, %c0_39, %c0_40] : memref<1x3x4x128xf32, #tpu.memory_space<vmem>>, vector<1x1x4x128xf32>
    %99 = vector.shape_cast %98 : vector<1x1x4x128xf32> to vector<4x128xf32>
    %100 = vector.shape_cast %97 : vector<4x128xf32> to vector<1x1x4x128xf32>
    tpu.vector_store %arg4[%c0_37, %c1_38, %c0_39, %c0_40], %100 {strides = array<i32>} : memref<1x3x4x128xf32, #tpu.memory_space<vmem>>, vector<1x1x4x128xf32>,
    %c0_41 = arith.constant 0 : index
    %c2_42 = arith.constant 2 : index
    %c0_43 = arith.constant 0 : index
    %c0_44 = arith.constant 0 : index
    %101 = vector.load %arg4[%c0_41, %c2_42, %c0_43, %c0_44] : memref<1x3x4x128xf32, #tpu.memory_space<vmem>>, vector<1x1x4x128xf32>
    %102 = vector.shape_cast %101 : vector<1x1x4x128xf32> to vector<4x128xf32>
    %103 = vector.broadcast %86 : vector<1x128xf32> to vector<4x128xf32>
    %104 = arith.addf %102, %103 : vector<4x128xf32>
    %c0_45 = arith.constant 0 : index
    %c2_46 = arith.constant 2 : index
    %c0_47 = arith.constant 0 : index
    %c0_48 = arith.constant 0 : index
    %105 = vector.load %arg4[%c0_45, %c2_46, %c0_47, %c0_48] : memref<1x3x4x128xf32, #tpu.memory_space<vmem>>, vector<1x1x4x128xf32>
    %106 = vector.shape_cast %105 : vector<1x1x4x128xf32> to vector<4x128xf32>
    %107 = vector.shape_cast %104 : vector<4x128xf32> to vector<1x1x4x128xf32>
    tpu.vector_store %arg4[%c0_45, %c2_46, %c0_47, %c0_48], %107 {strides = array<i32>} : memref<1x3x4x128xf32, #tpu.memory_space<vmem>>, vector<1x1x4x128xf32>,
    return
  }
  func.func @transform_0(%arg0: i32, %arg1: i32) -> (i32, i32, i32, i32) {
    %c0_i32 = arith.constant 0 : i32
    %c0_i32_0 = arith.constant 0 : i32
    %c0_i32_1 = arith.constant 0 : i32
    return %arg0, %c0_i32, %arg1, %c0_i32_0 : i32, i32, i32, i32
  }
  func.func @transform_1(%arg0: i32, %arg1: i32) -> (i32, i32, i32) {
    %c0_i32 = arith.constant 0 : i32
    %c0_i32_0 = arith.constant 0 : i32
    return %arg0, %arg1, %c0_i32 : i32, i32, i32
  }
  func.func @transform_2(%arg0: i32, %arg1: i32) -> (i32, i32, i32, i32) {
    %c0_i32 = arith.constant 0 : i32
    %c0_i32_0 = arith.constant 0 : i32
    %c0_i32_1 = arith.constant 0 : i32
    %c0_i32_2 = arith.constant 0 : i32
    return %arg0, %c0_i32, %c0_i32_0, %c0_i32_1 : i32, i32, i32, i32
  }
}

</mosaic_0001>

<bundles_post_ra>
// kernel: tpu_custom_call.1
= control target key start
LH: loop header
LB: loop body
LE: loop exit
PB: predicated region body
PF: predicated region fallthrough
CT: control target
= control target key end

     0   :  { %7 = vsyncpa [#allocation3], 0  ;;  %s1031_s0 = inlined_call_operand.hbm [shape: f32[2,4,2,128], index: 0, kind: input, shape index: {}]   ;;  %s1032_s1 = inlined_call_operand.hbm [shape: s32[2,2,128], index: 1, kind: input, shape index: {}]   ;;  %s1033_s2 = inlined_call_operand.hbm [shape: f32[2,3,4,128], index: 2, kind: output, shape index: {}]  }
   0x1   :  { %9 = vsyncpa [#allocation3 + $0x1], 0 }
   0x2   :  { %10 = vsyncpa [#allocation6], 0 }
   0x3   :  { %12 = vsyncpa [#allocation6 + $0x1], 0 }
   0x4   :  { %13 = vsyncpa [#allocation4], 0 }
   0x5   :  { %15 = vsyncpa [#allocation4 + $0x1], 0  ;;  %s777_s9 = smov 0   ;;  %s779_s10 = smov 0  }
   0x6   :  { %s781_s11 = smov 0   ;;  %s783_s12 = smov 0  }
   0x7   :  { %s785_s13 = smov 0   ;;  %s787_s14 = smov 0  }
   0x8 LB: > { %s493_s15 = sadd.s32 4294967295, %s752_s14   ;;  %s494_s16 = sadd.s32 4294967294, %s752_s14   ;;  %s752_s14 = sphi %s787_s14, %s21_s14   ;;  %s748_s13 = sphi %s785_s13, %s1052_s13   ;;  %s744_s12 = sphi %s783_s12, %s1051_s12   ;;  %s740_s11 = sphi %s781_s11, %s1050_s11   ;;  %s736_s10 = sphi %s779_s10, %s1049_s10   ;;  %s732_s9 = sphi %s777_s9, %s1048_s9  }
   0x9   : > { %s33_s17 = sadd.s32 1, %s748_s13  ;;  %s42_s18 = sadd.s32 1, %s740_s11 }
   0xa   : > { %p35_p0 = scmp.ge.s32.totalorder %s33_s17, 2  ;;  %p49_p1 = scmp.ne.s32.totalorder %s740_s11, %s736_s10 }
   0xb   : > { %p50_p2 = scmp.eq.s32.totalorder %s752_s14, 0  ;;  %p55_p3 = scmp.ne.s32.totalorder %s736_s10, %s732_s9 }
   0xc   : > { %s1054_s17 = smov (%p35_p0, %s33_s17), 0  ;;  %p56_p5 = scmp.eq.s32.totalorder %s493_s15, 0 }
   0xd   : > { %p818_p4 = por %p50_p2, %p49_p1  ;;  %s37_s20 = ssub.s32 %s748_s13, %s1054_s17 }
   0xe   : > { %p107_p6 = scmp.eq.s32.totalorder %s493_s15, 1  ;;  %p40_p7 = scmp.eq.s32.totalorder %s37_s20, 0 }
   0xf   : > { %p824_p8 = por %p56_p5, %p55_p3  ;;  %p113_p10 = scmp.eq.s32.totalorder %s494_s16, 1 }
  0x10   : > { %p828_p9 = por %p107_p6, %p49_p1  ;;  %p539_p13 = scmp.lt.s32.totalorder %s752_s14, 2 }
  0x11   : > { %s1037_s21 = scalar_select %p824_p8, 1, 0 }
  0x12   : > { %s1038_s22 = scalar_select %p828_p9, 1, 0 }
  0x13   : > { %s833_s23 = scalar_select %p40_p7, %s740_s11, %s42_s18  }
  0x14   : > { %p835_p11 = por %p113_p10, %p55_p3  ;;  %s842_s25 = sand.u32 1, %s740_s11  }
  0x15   : > { %s497_s26 = sshll.u32 %s842_s25, 3  ;;  %s519_s27 = sshll.u32 %s748_s13, 7 }
  0x16   : > { %s1039_s24 = scalar_select %p835_p11, 1, 0 }
  0x17   : > { %s849_s30 = scalar_lea.hbm %s1031_s0, %s519_s27  ;;  %s137_s3 = scalar_lea.vmem [#allocation2], %s497_s26 }
  0x18   : > { %s145_s4 = sshll.u32 %s137_s3, 4  ;;  %p855_p0 = pnand %p539_p13, %p818_p4  ;;  %s851_s4 = int_to_ptr.vmem [resolvable:$true] %s145_s4 }
  0x19   : > { %s134_s6 = scalar_lea.sflag [#allocation3], %s842_s25  ;;  %s606_s7 = scalar_lea.hbm %s849_s30, 128 }
  0x1a   : > { %p607_p2 = scmp.ne.s32.totalorder %s849_s30, %s606_s7  ;;  %p608_p3 = pneg %p855_p0 }
  0x1b   : > { %s611_s16 = scalar_lea.hbm %s1031_s0, 256  ;;  %p612_p4 = scmp.lt.u32.totalorder %s849_s30, %s1031_s0 }
  0x1c   : > { %p609_p5 = pnand %p608_p3, %p607_p2  ;;  %p613_p7 = scmp.lt.u32.totalorder %s611_s16, %s606_s7 }
  0x1d   : > { %p615_p13 = scmp.lt.u32.totalorder %s606_s7, %s849_s30 }
  0x1e   : > { %p610_p6 = pneg %p609_p5  ;;  %p614_p10 = por %p613_p7, %p612_p4 }
  0x20   : > { %p616_p12 = por %p615_p13, %p614_p10 }
  0x22   : > { %p617_p1 = pnand %p616_p12, %p610_p6 }
  0x24   : > { %620 = shalt.err (!%p617_p1)
}
  0x25   : > { %s621_s20 = scalar_lea.vmem %s851_s4, 128  ;;  %s754_s26 = smov [#allocation2]  }
  0x26   : > { %p622_p2 = scmp.ne.s32.totalorder %s851_s4, %s621_s20  ;;  %s626_s27 = sshll.u32 %s754_s26, 4  ;;  %s627_s27 = int_to_ptr.vmem [resolvable:$false] %s626_s27 }
  0x27   : > { %s628_s28 = scalar_lea.vmem %s627_s27, 256  ;;  %p629_p9 = scmp.lt.s32.totalorder %s851_s4, %s627_s27 }
  0x28   : > { %p624_p5 = pnand %p622_p2, %p608_p3  ;;  %p630_p4 = scmp.lt.s32.totalorder %s628_s28, %s621_s20 }
  0x2a   : > { %p625_p11 = pneg %p624_p5  ;;  %p631_p7 = por %p630_p4, %p629_p9 }
  0x2c   : > { %p632_p10 = pnand %p631_p7, %p625_p11 }
  0x2e   : > { %635 = shalt.err (!%p632_p10)
}
  0x2f   : > { %s755_s29 = smov 32   ;;  %s756_s3 = smov 2  }
  0x30   : > { %531 = dma.hbm_to_vmem [thread:$0]  (!%p855_p0), %s849_s30, 128, %s851_s4, %s134_s6, %s755_s29, %s755_s29, %s756_s3  }
  0x31   : > { %p172_p12 = scmp.lt.s32.totalorder %s752_s14, 3  ;;  %s500_s7 = sshll.u32 %s842_s25, 1 }
  0x32   : > { %s501_s8 = sshll.u32 %s748_s13, 5  ;;  %p1041_p9 = scmp.ge.s32.totalorder %s752_s14, 1 }
  0x33   : > { %s900_s19 = scalar_lea.hbm %s1032_s1, %s501_s8  ;;  %s159_s20 = scalar_lea.vmem [#allocation5], %s500_s7 }
  0x34   : > { %p893_p11 = pnand %p1041_p9, %p172_p12  ;;  %s167_s26 = sshll.u32 %s159_s20, 4  ;;  %s168_s26 = int_to_ptr.vmem [resolvable:$true] %s167_s26 }
  0x35   : > { %s156_s30 = scalar_lea.sflag [#allocation6], %s842_s25  ;;  %s636_s4 = scalar_lea.hbm %s900_s19, 32 }
  0x36   : > { %s1042_s15 = scalar_select %p893_p11, 1, 0 }
  0x37   : > { %p637_p1 = scmp.ne.s32.totalorder %s900_s19, %s636_s4  ;;  %s641_s28 = scalar_lea.hbm %s1032_s1, 64 }
  0x38   : > { %p642_p2 = scmp.lt.u32.totalorder %s900_s19, %s1032_s1  ;;  %p643_p5 = scmp.lt.u32.totalorder %s641_s28, %s636_s4 }
  0x39   : > { %p639_p6 = pnand %p637_p1, %p608_p3  ;;  %p645_p7 = scmp.lt.u32.totalorder %s636_s4, %s900_s19 }
  0x3a   : > { %p644_p4 = por %p643_p5, %p642_p2 }
  0x3b   : > { %p640_p13 = pneg %p639_p6 }
  0x3c   : > { %p646_p10 = por %p645_p7, %p644_p4 }
  0x3e   : > { %p647_p12 = pnand %p646_p10, %p640_p13 }
  0x40   : > { %650 = shalt.err (!%p647_p12)
}
  0x41   : > { %s651_s25 = scalar_lea.vmem %s168_s26, 32  ;;  %s757_s7 = smov [#allocation5]  }
  0x42   : > { %p652_p9 = scmp.ne.s32.totalorder %s168_s26, %s651_s25  ;;  %s656_s8 = sshll.u32 %s757_s7, 4  ;;  %s657_s8 = int_to_ptr.vmem [resolvable:$false] %s656_s8 }
  0x43   : > { %s658_s16 = scalar_lea.vmem %s657_s8, 64  ;;  %p659_p8 = scmp.lt.s32.totalorder %s168_s26, %s657_s8 }
  0x44   : > { %p654_p1 = pnand %p652_p9, %p608_p3  ;;  %p660_p11 = scmp.lt.s32.totalorder %s658_s16, %s651_s25 }
  0x46   : > { %p655_p6 = pneg %p654_p1  ;;  %p661_p2 = por %p660_p11, %p659_p8 }
  0x48   : > { %p662_p5 = pnand %p661_p2, %p655_p6 }
  0x4a   : > { %665 = shalt.err (!%p662_p5)
}
  0x4b   : > { %534 = dma.hbm_to_vmem [thread:$0]  (!%p855_p0), %s900_s19, 32, %s168_s26, %s156_s30  }
  0x4c   : > { %p1043_p13 = scmp.ne.s32.totalorder %s1042_s15, 0 }
  0x4d   : > { %s925_s18 = sand.u32 (!%p1043_p13), 1, %s736_s10   ;;  %p1044_p3 = scmp.ne.s32.totalorder (!%p1043_p13), %s1037_s21, 0 }
  0x4e   : > { %176 = sbr.rel (%p1043_p13) target bundleno = 181 (0xb5), region = 28  ;;  %s503_s20 = sshll.u32 (!%p1043_p13), %s925_s18, 3 }
  0x4f   : > { %s179_s4 = scalar_lea.sflag (!%p1043_p13), [#allocation3], %s925_s18  ;;  %s182_s6 = scalar_lea.vmem (!%p1043_p13), [#allocation2], %s503_s20 }
  0x55   : > { %719 = dma.done.wait (%p1044_p3), %s179_s4, 128  }
  0x56   : > { %721 = vsyncadd (%p1044_p3), %s179_s4, 4294967168  ;;  %s504_s5 = sshll.u32 %s925_s18, 1  ;;  %s188_s15 = scalar_lea.sflag [#allocation6], %s925_s18 }
  0x57   : > { %s191_s19 = scalar_lea.vmem [#allocation5], %s504_s5 }
  0x58   : > { %723 = dma.done.wait (%p1044_p3), %s188_s15, 32  }
  0x59   : > { %725 = vsyncadd (%p1044_p3), %s188_s15, 4294967264  ;;  %s520_s26 = smul.u32 12, %s925_s18  ;;  %v758_v0 = vmov 0.0   ;;  %v225_v1 = vld [vmem:[%s182_s6] sm:$0x3]  ;;  %vm258_vm4 = vcmask 1041408  }
  0x5a   : > { %v505_v2 = vld [vmem:[%s182_s6 + $0x2] sm:$0x3]  ;;  %v506_v3 = vld [vmem:[%s182_s6 + $0x4] sm:$0x3]  ;;  %v507_v5 = vld [vmem:[%s182_s6 + $0x6] sm:$0x3] }
  0x5b   : > { %s940_s30 = scalar_lea.vmem [#allocation7], %s520_s26  ;;  %v232_v4 = vmax.f32 %v225_v1, %v505_v2  ;;  %v224_v16 = vld [vmem:[%s191_s19] sm:$0x3]  ;;  %vm354_vm5 = vcmask 1040384   ;;  %vm357_vm6 = vcmask 1042432   ;;  %s521_s21 = smul.u32 192, %s744_s12 }
  0x5c   : > { %221 = vst [vmem:[%s940_s30] sm:$0xf] %v758_v0  ;;  %222 = vst [vmem:[%s940_s30 + $0x4] sm:$0xf] %v758_v0  ;;  %vm253_vm0 = vcmp.eq.s32.totalorder %v224_v16, 0  ;;  %vm275_vm1 = vcmp.eq.s32.totalorder %v224_v16, 1  ;;  %vm298_vm2 = vcmp.eq.s32.totalorder %v224_v16, 2 }
  0x5d   : > { %223 = vst [vmem:[%s940_s30 + $0x8] sm:$0xf] %v758_v0  ;;  %v233_v6 = vmax.f32 %v232_v4, %v506_v3  ;;  %v508_v23 = vsel %vm253_vm0, 1.0, %v758_v0  ;;  %v509_v24 = vsel %vm275_vm1, 1.0, %v758_v0  ;;  %v510_v28 = vsel %vm298_vm2, 1.0, %v758_v0  ;;  %s386_s27 = sshll.u32 %s940_s30, 4  ;;  %s979_s3 = scalar_lea.hbm %s1033_s2, %s521_s21  ;;  %s981_s27 = int_to_ptr.vmem [resolvable:$true] %s386_s27 }
  0x5e   : > { %vm321_vm3 = vcmp.eq.s32.totalorder %v224_v16, 3  ;;  %v297_v30 = vadd.f32 %v509_v24, %v508_v23  ;;  %s373_s25 = scalar_lea.sflag [#allocation4], %s925_s18  ;;  %s666_s7 = scalar_lea.vmem %s981_s27, 192 }
  0x5f   : > { %v234_v7 = vmax.f32 %v233_v6, %v507_v5  ;;  %v511_v32 = vsel %vm321_vm3, 1.0, %v758_v0  ;;  %p667_p8 = scmp.ne.s32.totalorder %s981_s27, %s666_s7  ;;  %p1045_p0 = scmp.ne.s32.totalorder %s1038_s22, 0 }
  0x60   : > { %v320_v34 = vadd.f32 %v510_v28, %v297_v30  ;;  %s759_s12 = smov [#allocation7]  }
  0x61   : > { %v235_v8 = vsub.f32 %v225_v1, %v234_v7  ;;  %v236_v9 = vsub.f32 %v505_v2, %v234_v7  ;;  %v237_v10 = vsub.f32 %v506_v3, %v234_v7  ;;  %v238_v11 = vsub.f32 %v507_v5, %v234_v7  ;;  %p668_p11 = pnand %p667_p8, %p1045_p0  ;;  %s670_s8 = sshll.u32 %s759_s12, 4  ;;  %s671_s8 = int_to_ptr.vmem [resolvable:$false] %s670_s8 }
  0x62   : > { %v949_v44 = vadd.f32 %v511_v32, %v320_v34  ;;  %s672_s16 = scalar_lea.vmem %s671_s8, 384  ;;  %p673_p7 = scmp.lt.s32.totalorder %s981_s27, %s671_s8 }
  0x63   : > { %v239_v12 = vmul.f32 1.442695, %v235_v8  ;;  %v241_v13 = vmul.f32 1.442695, %v236_v9  ;;  %v243_v14 = vmul.f32 1.442695, %v237_v10  ;;  %v274_v26 = vmul.f32 %v508_v23, %v235_v8  ;;  %p669_p4 = pneg %p668_p11  ;;  %p674_p10 = scmp.lt.s32.totalorder %s672_s16, %s666_s7 }
  0x64   : > { %v245_v15 = vmul.f32 1.442695, %v238_v11  ;;  %v295_v27 = vmul.f32 %v509_v24, %v236_v9  ;;  %v318_v31 = vmul.f32 %v510_v28, %v237_v10  ;;  %v341_v35 = vmul.f32 %v511_v32, %v238_v11 }
  0x65   : > { %594 = vpow2.f32 %v239_v12  ;;  %p675_p12 = por %p674_p10, %p673_p7 }
  0x66   : > { %596 = vpow2.f32 %v241_v13  ;;  %v296_v29 = vadd.f32 %v295_v27, %v274_v26 }
  0x67   : > { %598 = vpow2.f32 %v243_v14  ;;  %p676_p9 = pnand %p675_p12, %p669_p4 }
  0x68   : > { %600 = vpow2.f32 %v245_v15  ;;  %v319_v33 = vadd.f32 %v318_v31, %v296_v29 }
  0x6a   : > { %v947_v43 = vadd.f32 %v341_v35, %v319_v33 }
  0x6f   : > { %v595_v17 = vpop.eup %594 }
  0x70   : > { %v597_v18 = vpop.eup %596 }
  0x71   : > { %v599_v19 = vpop.eup %598  ;;  %v247_v20 = vadd.f32 %v597_v18, %v595_v17 }
  0x72   : > { %v601_v21 = vpop.eup %600 }
  0x73   : > { %v248_v22 = vadd.f32 %v599_v19, %v247_v20 }
  0x75   : > { %v249_v25 = vadd.f32 %v601_v21, %v248_v22 }
  0x77   : > { %602 = vrcp.f32 %v249_v25 }
  0x78   : > { %604 = vlog2.f32 %v249_v25 }
  0x81   : > { %v603_v36 = vpop.eup %602 }
  0x82   : > { %v605_v37 = vpop.eup %604  ;;  %v256_v38 = vmul.f32 %v603_v36, %v595_v17  ;;  %v278_v39 = vmul.f32 %v603_v36, %v597_v18  ;;  %v301_v40 = vmul.f32 %v603_v36, %v599_v19  ;;  %v324_v41 = vmul.f32 %v603_v36, %v601_v21 }
  0x83   : > { %v945_v42 = vmul.f32 0.6931472, %v605_v37 }
  0x84   : > { %v257_v45 = vmul.f32 %v508_v23, %v256_v38  ;;  %v279_v46 = vmul.f32 %v509_v24, %v278_v39  ;;  %v302_v47 = vmul.f32 %v510_v28, %v301_v40  ;;  %v325_v48 = vmul.f32 %v511_v32, %v324_v41 }
  0x85   : > { %v266_v49 = vadd.f32 %v508_v23, %v256_v38  ;;  %v287_v50 = vadd.f32 %v509_v24, %v278_v39  ;;  %v310_v51 = vadd.f32 %v510_v28, %v301_v40  ;;  %v333_v52 = vadd.f32 %v511_v32, %v324_v41  ;;  %v353_v41 = vld [vmem:[%s940_s30] sm:$0xf] }
  0x86   : > { %v259_v53 = vsel %vm258_vm4, %v257_v45, 0.0  ;;  %v280_v54 = vsel %vm258_vm4, %v279_v46, 0.0  ;;  %v303_v55 = vsel %vm258_vm4, %v302_v47, 0.0  ;;  %v326_v56 = vsel %vm258_vm4, %v325_v48, 0.0 }
  0x87   : > { %v260_v57 = vrot.slane %v259_v53, 4  ;;  %v281_v58 = vrot.slane %v280_v54, 4  ;;  %v304_v59 = vrot.slane %v303_v55, 4  ;;  %v327_v60 = vrot.slane %v326_v56, 4 }
  0x88   : > { %v267_v61 = vsel %vm258_vm4, %v266_v49, 0.0  ;;  %v288_v62 = vsel %vm258_vm4, %v287_v50, 0.0  ;;  %v311_v63 = vsel %vm258_vm4, %v310_v51, 0.0  ;;  %v334_v0 = vsel %vm258_vm4, %v333_v52, 0.0 }
  0x89   : > { %v261_v1 = vadd.f32 %v260_v57, %v259_v53  ;;  %v282_v2 = vadd.f32 %v281_v58, %v280_v54  ;;  %v305_v3 = vadd.f32 %v304_v59, %v303_v55  ;;  %v328_v4 = vadd.f32 %v327_v60, %v326_v56  ;;  %v512_v55 = vld [vmem:[%s940_s30 + $0x4] sm:$0xf] }
  0x8a   : > { %v268_v5 = vrot.slane %v267_v61, 4  ;;  %v289_v6 = vrot.slane %v288_v62, 4  ;;  %v312_v7 = vrot.slane %v311_v63, 4  ;;  %v335_v8 = vrot.slane %v334_v0, 4 }
  0x8b   : > { %v262_v9 = vrot.slane %v261_v1, 2  ;;  %v283_v10 = vrot.slane %v282_v2, 2  ;;  %v306_v11 = vrot.slane %v305_v3, 2  ;;  %v329_v12 = vrot.slane %v328_v4, 2 }
  0x8c   : > { %v269_v13 = vadd.f32 %v268_v5, %v267_v61  ;;  %v290_v14 = vadd.f32 %v289_v6, %v288_v62  ;;  %v313_v15 = vadd.f32 %v312_v7, %v311_v63  ;;  %v336_v16 = vadd.f32 %v335_v8, %v334_v0  ;;  %v514_v63 = vld [vmem:[%s940_s30 + $0x8] sm:$0xf] }
  0x8d   : > { %v263_v17 = vadd.f32 %v262_v9, %v261_v1  ;;  %v284_v18 = vadd.f32 %v283_v10, %v282_v2  ;;  %v307_v19 = vadd.f32 %v306_v11, %v305_v3  ;;  %v330_v20 = vadd.f32 %v329_v12, %v328_v4 }
  0x8e   : > { %v270_v21 = vrot.slane %v269_v13, 2  ;;  %v291_v22 = vrot.slane %v290_v14, 2  ;;  %v314_v23 = vrot.slane %v313_v15, 2  ;;  %v337_v24 = vrot.slane %v336_v16, 2 }
  0x8f   : > { %v264_v25 = vrot.slane %v263_v17, 1  ;;  %v285_v26 = vrot.slane %v284_v18, 1  ;;  %v308_v27 = vrot.slane %v307_v19, 1  ;;  %v331_v28 = vrot.slane %v330_v20, 1 }
  0x90   : > { %v271_v29 = vadd.f32 %v270_v21, %v269_v13  ;;  %v292_v30 = vadd.f32 %v291_v22, %v290_v14  ;;  %v315_v31 = vadd.f32 %v314_v23, %v313_v15  ;;  %v338_v32 = vadd.f32 %v337_v24, %v336_v16 }
  0x91   : > { %v265_v33 = vadd.f32 %v264_v25, %v263_v17  ;;  %v286_v34 = vadd.f32 %v285_v26, %v284_v18  ;;  %v309_v35 = vadd.f32 %v308_v27, %v307_v19  ;;  %v332_v36 = vadd.f32 %v331_v28, %v330_v20 }
  0x92   : > { %v272_v37 = vrot.slane %v271_v29, 1  ;;  %v293_v38 = vrot.slane %v292_v30, 1  ;;  %v316_v39 = vrot.slane %v315_v31, 1  ;;  %v339_v40 = vrot.slane %v338_v32, 1 }
  0x93   : > { %v355_v45 = vsel %vm354_vm5, %v265_v33, %v286_v34  ;;  %v344_v46 = vmul.f32 %v949_v44, %v945_v42 }
  0x94   : > { %v356_v47 = vsel %vm258_vm4, %v355_v45, %v309_v35  ;;  %v273_v48 = vadd.f32 %v272_v37, %v271_v29  ;;  %v294_v49 = vadd.f32 %v293_v38, %v292_v30  ;;  %v317_v50 = vadd.f32 %v316_v39, %v315_v31 }
  0x95   : > { %v358_v51 = vsel %vm357_vm6, %v356_v47, %v332_v36  ;;  %v340_v52 = vadd.f32 %v339_v40, %v338_v32  ;;  %v345_v53 = vsub.f32 %v344_v46, %v947_v43 }
  0x96   : > { %v359_v54 = vadd.f32 %v358_v51, %v353_v41  ;;  %v363_v56 = vsel %vm354_vm5, %v273_v48, %v294_v49 }
  0x97   : > { %v364_v42 = vsel %vm258_vm4, %v363_v56, %v317_v50  ;;  %v346_v44 = vsel %vm258_vm4, %v345_v53, 0.0 }
  0x98   : > { %360 = vst [vmem:[%s940_s30] sm:$0xf] %v359_v54  ;;  %v365_v57 = vsel %vm357_vm6, %v364_v42, %v340_v52  ;;  %v347_v58 = vrot.slane %v346_v44, 4 }
  0x99   : > { %v366_v59 = vadd.f32 %v512_v55, %v365_v57 }
  0x9a   : > { %v348_v60 = vadd.f32 %v347_v58, %v346_v44 }
  0x9b   : > { %513 = vst [vmem:[%s940_s30 + $0x4] sm:$0xf] %v366_v59 }
  0x9c   : > { %v349_v43 = vrot.slane %v348_v60, 2 }
  0x9e   : > { %v350_v61 = vadd.f32 %v349_v43, %v348_v60 }
  0xa0   : > { %v351_v62 = vrot.slane %v350_v61, 1 }
  0xa2   : > { %v352_v0 = vadd.f32 %v351_v62, %v350_v61 }
  0xa4   : > { %v370_v1 = vadd.f32 %v514_v63, %v352_v0 }
  0xa6   : > { %515 = vst [vmem:[%s940_s30 + $0x8] sm:$0xf] %v370_v1 }
  0xa7   : > { %679 = shalt.err (!%p676_p9)
}
  0xa8   : > { %s680_s20 = scalar_lea.hbm %s979_s3, 192  ;;  %s684_s5 = scalar_lea.hbm %s1033_s2, 384 }
  0xa9   : > { %p681_p1 = scmp.ne.s32.totalorder %s979_s3, %s680_s20  ;;  %p685_p5 = scmp.lt.u32.totalorder %s979_s3, %s1033_s2 }
  0xaa   : > { %p686_p13 = scmp.lt.u32.totalorder %s684_s5, %s680_s20  ;;  %p688_p8 = scmp.lt.u32.totalorder %s680_s20, %s979_s3 }
  0xab   : > { %p682_p6 = pnand %p681_p1, %p1045_p0 }
  0xac   : > { %p687_p3 = por %p686_p13, %p685_p5 }
  0xad   : > { %p683_p2 = pneg %p682_p6 }
  0xae   : > { %p689_p11 = por %p688_p8, %p687_p3 }
  0xb0   : > { %p690_p4 = pnand %p689_p11, %p683_p2 }
  0xb2   : > { %693 = shalt.err (!%p690_p4)
}
  0xb3   : > { %s760_s26 = smov 64   ;;  %s761_s30 = smov 4  }
  0xb4   : > { %526 = dma.vmem_to_hbm [thread:$0]  (%p1045_p0), %s981_s27, 192, %s979_s3, %s373_s25, %s760_s26, %s760_s26, %s761_s30  }
  0xb5 PF: > { %s401_s21 = sand.u32 1, %s732_s9   ;;  %p1046_p7 = scmp.ne.s32.totalorder %s1039_s24, 0 }
  0xb6   : > { %p1047_p10 = scmp.ge.s32.totalorder %s752_s14, 2  ;;  %s402_s28 = scalar_lea.sflag [#allocation4], %s401_s21 }
  0xb8   : > { %p536_p12 = pnand %p1047_p10, %p1046_p7 }
  0xba   : > { %727 = dma.done.wait (!%p536_p12), %s402_s28, 192  }
  0xbb   : > { %729 = vsyncadd (!%p536_p12), %s402_s28, 4294967104  ;;  %s21_s14 = sadd.s32 1, %s752_s14   ;;  %s1048_s9 = smov %s736_s10 }
  0xbc   : > { %p18_p9 = scmp.ge.s32.totalorder %s21_s14, 4   ;;  %s1049_s10 = smov %s740_s11 }
  0xbd   : > { %s1050_s11 = smov %s833_s23  ;;  %s1051_s12 = smov %s748_s13 }
  0xbe   : > { %s1052_s13 = smov %s1054_s17  ;;  %20 = sbr.rel (!%p18_p9) target bundleno = 8 (0x8), region = 95 }
  0xc5   :  { %407 = vsyncpa [#allocation3], 1 }
  0xc6   :  { %409 = vsyncpa [#allocation3 + $0x1], 1 }
  0xc7   :  { %410 = vsyncpa [#allocation6], 1 }
  0xc8   :  { %412 = vsyncpa [#allocation6 + $0x1], 1 }
  0xc9   :  { %413 = vsyncpa [#allocation4], 1 }
  0xca   :  { %415 = vsyncpa [#allocation4 + $0x1], 1 }

</bundles_post_ra>
